<compile_context>
chip_gen: v7x
topology: tpu7x:2x2x1
jax: 0.10.0
libtpu: 0.0.40
codegen_flags: <defaults>
</compile_context>

<pallas_src>
import functools

import jax
import jax.numpy as jnp
from jax.experimental import pallas as pl
from jax.experimental.pallas import tpu as pltpu


def _round_up(a, m):
    return ((a + m - 1) // m) * m


@functools.lru_cache(maxsize=None)
def _single_buffer_supported():
    """Probe once whether pipeline_mode=pl.Buffered(1) compiles & is correct here."""
    def k(x_ref, o_ref):
        o_ref[...] = x_ref[...] + 1.0

    try:
        x = jnp.arange(8 * 128, dtype=jnp.float32).reshape(8, 128)
        out = pl.pallas_call(
            k,
            out_shape=jax.ShapeDtypeStruct((16, 128), jnp.float32),
            grid=(2,),
            in_specs=[pl.BlockSpec((8, 128), lambda i: (0, 0),
                                   pipeline_mode=pl.Buffered(1))],
            out_specs=pl.BlockSpec((8, 128), lambda i: (i, 0)),
        )(x)
        out = jax.block_until_ready(out)
        expect = jnp.concatenate([x + 1.0, x + 1.0], axis=0)
        return bool(jnp.allclose(out, expect))
    except Exception:
        return False


def _default_vmem_limit():
    """~100 MiB scoped VMEM, clamped to the chip's physical capacity (v7x: 64 MiB)."""
    try:
        cap = int(pltpu.get_tpu_info().vmem_capacity_bytes)
    except Exception:
        cap = 64 * 1024 * 1024
    return min(100 * 1024 * 1024, cap)


# ---------------------------------------------------------------------------
# Kernel: per (row-tile i, vocab-tile j) compute logits tile, online logsumexp,
# stash raw logits in the resident output block, finalize on the last vocab step.
# ---------------------------------------------------------------------------
def _generator_kernel(x_ref, w_ref, b_ref, o_ref, m_ref, l_ref):
    j = pl.program_id(1)
    n_j = pl.num_programs(1)

    @pl.when(j == 0)
    def _init():
        m_ref[...] = jnp.full_like(m_ref, -jnp.inf)
        l_ref[...] = jnp.zeros_like(l_ref)

    # (tm, tn) logits tile; MXU matmul with f32 accumulation, bias added in f32.
    logits = (jnp.dot(x_ref[...], w_ref[...], preferred_element_type=jnp.float32)
              + b_ref[...])

    # Online logsumexp over the vocab axis (only (tm, 1) carries stay live).
    m_prev = m_ref[...]
    m_new = jnp.maximum(m_prev, jnp.max(logits, axis=-1, keepdims=True))
    l_ref[...] = (l_ref[...] * jnp.exp(m_prev - m_new)
                  + jnp.sum(jnp.exp(logits - m_new), axis=-1, keepdims=True))
    m_ref[...] = m_new

    # Stash raw logits in the VMEM-resident f32 output block (lane-dense store).
    tn = logits.shape[-1]
    col0 = pl.multiple_of(j * tn, 128)
    o_ref[:, pl.ds(col0, tn)] = logits.astype(o_ref.dtype)

    # Finalize: out = logits - (m + log(l)); written once on the last vocab step.
    @pl.when(j == n_j - 1)
    def _finalize():
        lse = m_ref[...] + jnp.log(l_ref[...])
        o_ref[...] = (o_ref[...] - lse).astype(o_ref.dtype)


# ---------------------------------------------------------------------------
# Wrapper
# ---------------------------------------------------------------------------
def generator_pallas(x, w, b, *, block_rows=512, vocab_block=2048,
                     out_block_budget_bytes=16 * 1024 * 1024,
                     compute_dtype=None, vmem_limit_bytes=None):
    """x: (B, S, D), w: (D, V) [= PyTorch weight.T], b: (V,) -> (B, S, V)."""
    B, S, D = x.shape
    V = w.shape[1]
    R = B * S

    # --- vocab tiling / lane alignment --------------------------------------
    tn = min(_round_up(V, 128), _round_up(vocab_block, 128))
    Vp = _round_up(V, tn)                       # tn always divides Vp
    if Vp != V:
        # Padded columns: zero weights, -1e30 bias -> excluded from the softmax.
        w = jnp.pad(w, ((0, 0), (0, Vp - V)))
        b = jnp.pad(b, ((0, Vp - V),), constant_values=-1e30)
    n_vtiles = Vp // tn

    # --- row tiling ----------------------------------------------------------
    # >= 2 grid steps so both v7x TensorCores get work; cap the resident
    # (tm, Vp) f32 output block by a VMEM budget (matters at production vocab).
    tm = min(block_rows, max(8, _round_up(pl.cdiv(R, 2), 8)))
    tm_cap = max(8, (out_block_budget_bytes // (Vp * 4)) // 8 * 8)
    tm = min(tm, tm_cap)
    n_rtiles = pl.cdiv(R, tm)        # last block may overhang; Pallas masks its store

    x2 = x.reshape(R, D)
    b2 = b.reshape(1, Vp)            # bias stays f32 (added after f32 accumulate)
    if compute_dtype is not None:    # optional bf16 MXU inputs for v6e/v7x
        x2 = x2.astype(compute_dtype)
        w = w.astype(compute_dtype)

    # --- BlockSpecs -----------------------------------------------------------
    # Single-buffer weight/bias when fully resident (constant index_map).
    single_buf = (n_vtiles == 1) and _single_buffer_supported()
    if single_buf:
        w_spec = pl.BlockSpec((D, tn), lambda i, j: (0, j),
                              pipeline_mode=pl.Buffered(1))
        b_spec = pl.BlockSpec((1, tn), lambda i, j: (0, j),
                              pipeline_mode=pl.Buffered(1))
    else:
        w_spec = pl.BlockSpec((D, tn), lambda i, j: (0, j))
        b_spec = pl.BlockSpec((1, tn), lambda i, j: (0, j))

    itemsize = jnp.dtype(x2.dtype).itemsize
    cost = pl.CostEstimate(
        flops=2 * R * D * Vp,
        transcendentals=R * Vp,
        bytes_accessed=(R * D + D * Vp) * itemsize + (Vp + R * Vp) * 4,
    )

    if vmem_limit_bytes is None:
        vmem_limit_bytes = _default_vmem_limit()

    out = pl.pallas_call(
        _generator_kernel,
        out_shape=jax.ShapeDtypeStruct((R, Vp), jnp.float32),
        grid=(n_rtiles, n_vtiles),
        in_specs=[
            pl.BlockSpec((tm, D), lambda i, j: (i, 0)),   # activations, row-tiled
            w_spec,                                       # weight, vocab-streamed
            b_spec,                                       # bias, vocab-streamed
        ],
        out_specs=pl.BlockSpec((tm, Vp), lambda i, j: (i, 0)),  # resident across j
        scratch_shapes=[
            pltpu.VMEM((tm, 1), jnp.float32),   # running row max
            pltpu.VMEM((tm, 1), jnp.float32),   # running row sum-exp
        ],
        compiler_params=pltpu.CompilerParams(
            dimension_semantics=("parallel", "arbitrary"),
            vmem_limit_bytes=vmem_limit_bytes),
        cost_estimate=cost,
    )(x2, w, b2)

    if Vp != V:
        out = out[:, :V]
    return out.reshape(B, S, V).astype(x.dtype)


# ---------------------------------------------------------------------------
# Pure-JAX reference (mirrors the PyTorch forward exactly)
# ---------------------------------------------------------------------------
def reference(x, w, b):
    return jax.nn.log_softmax(x @ w + b, axis=-1)


# ---------------------------------------------------------------------------
if __name__ == "__main__":
    batch, seq, d_model, vocab = 2, 8, 32, 128

    key = jax.random.PRNGKey(0)
    k_x, k_w, k_b = jax.random.split(key, 3)

    x = jax.random.normal(k_x, (batch, seq, d_model), jnp.float32)
    w = jax.random.normal(k_w, (d_model, vocab), jnp.float32) * 0.1   # PyTorch weight.T
    b = jax.random.normal(k_b, (vocab,), jnp.float32) * 0.1

    fwd = jax.jit(generator_pallas)
    out = fwd(x, w, b)
    out = jax.block_until_ready(out)

    ref = reference(x, w, b)

    assert out.shape == (batch, seq, vocab)
    assert jnp.allclose(out, ref, atol=1e-5, rtol=1e-5)
    # log_softmax rows must logsumexp to ~0
    assert jnp.allclose(jax.scipy.special.logsumexp(out, axis=-1),
                        jnp.zeros((batch, seq)), atol=1e-5)

    print("KERNEL_OK")
</pallas_src>

<mosaic_0001>
module attributes {stable_mosaic.version = 11 : i64} {
  func.func @_generator_kernel(%arg0: i32, %arg1: i32, %arg2: memref<8x32xf32, #tpu.memory_space<vmem>>, %arg3: memref<32x128xf32, #tpu.memory_space<vmem>>, %arg4: memref<1x128xf32, #tpu.memory_space<vmem>>, %arg5: memref<8x128xf32, #tpu.memory_space<vmem>>, %arg6: memref<8x1xf32, #tpu.memory_space<vmem>>, %arg7: memref<8x1xf32, #tpu.memory_space<vmem>>) attributes {dimension_semantics = [#tpu.dimension_semantics<parallel>, #tpu.dimension_semantics<arbitrary>], iteration_bounds = array<i64: 2, 1>, scalar_prefetch = 0 : i64, scratch_operands = 2 : i64, tpu.core_type = #tpu.core_type<tc>, window_params = [{transform_indices = @transform_0, window_bounds = array<i64: 8, 32>}, {transform_indices = @transform_1, window_bounds = array<i64: 32, 128>}, {transform_indices = @transform_2, window_bounds = array<i64: 1, 128>}, {transform_indices = @transform_3, window_bounds = array<i64: 8, 128>}]} {
    %c0_i32 = arith.constant 0 : i32
    %0 = arith.cmpi eq, %arg1, %c0_i32 : i32
    %1 = arith.extui %0 : i1 to i32
    %c0_i32_0 = arith.constant 0 : i32
    %2 = arith.cmpi ne, %1, %c0_i32_0 : i32
    scf.if %2 {
      %cst_19 = arith.constant 0xFF800000 : f32
      %32 = vector.broadcast %cst_19 : f32 to vector<8x1xf32>
      %c0_20 = arith.constant 0 : index
      %c0_21 = arith.constant 0 : index
      %33 = vector.load %arg6[%c0_20, %c0_21] : memref<8x1xf32, #tpu.memory_space<vmem>>, vector<8x1xf32>
      tpu.vector_store %arg6[%c0_20, %c0_21], %32 {strides = array<i32>} : memref<8x1xf32, #tpu.memory_space<vmem>>, vector<8x1xf32>,
      %cst_22 = arith.constant 0.000000e+00 : f32
      %34 = vector.broadcast %cst_22 : f32 to vector<8x1xf32>
      %c0_23 = arith.constant 0 : index
      %c0_24 = arith.constant 0 : index
      %35 = vector.load %arg7[%c0_23, %c0_24] : memref<8x1xf32, #tpu.memory_space<vmem>>, vector<8x1xf32>
      tpu.vector_store %arg7[%c0_23, %c0_24], %34 {strides = array<i32>} : memref<8x1xf32, #tpu.memory_space<vmem>>, vector<8x1xf32>,
    } else {
    }
    %c0 = arith.constant 0 : index
    %c0_1 = arith.constant 0 : index
    %3 = vector.load %arg2[%c0, %c0_1] : memref<8x32xf32, #tpu.memory_space<vmem>>, vector<8x32xf32>
    %c0_2 = arith.constant 0 : index
    %c0_3 = arith.constant 0 : index
    %4 = vector.load %arg3[%c0_2, %c0_3] : memref<32x128xf32, #tpu.memory_space<vmem>>, vector<32x128xf32>
    %cst = arith.constant dense<0.000000e+00> : vector<8x128xf32>
    %5 = tpu.matmul %3, %4, %cst {dimension_numbers = #tpu.dot_dimension_numbers<[1], [0], [0], [1], [0, 0, 1, 1], [], []>} : vector<8x32xf32>, vector<32x128xf32>, vector<8x128xf32> -> vector<8x128xf32>
    %c0_4 = arith.constant 0 : index
    %c0_5 = arith.constant 0 : index
    %6 = vector.load %arg4[%c0_4, %c0_5] : memref<1x128xf32, #tpu.memory_space<vmem>>, vector<1x128xf32>
    %7 = vector.broadcast %6 : vector<1x128xf32> to vector<8x128xf32>
    %8 = arith.addf %5, %7 : vector<8x128xf32>
    %c0_6 = arith.constant 0 : index
    %c0_7 = arith.constant 0 : index
    %9 = vector.load %arg6[%c0_6, %c0_7] : memref<8x1xf32, #tpu.memory_space<vmem>>, vector<8x1xf32>
    %cst_8 = arith.constant dense<0xFF800000> : vector<8xf32>
    %10 = vector.multi_reduction <maximumf>, %8, %cst_8 [1] : vector<8x128xf32> to vector<8xf32>
    %11 = vector.shape_cast %10 : vector<8xf32> to vector<8x1xf32>
    %12 = arith.maximumf %9, %11 : vector<8x1xf32>
    %c0_9 = arith.constant 0 : index
    %c0_10 = arith.constant 0 : index
    %13 = vector.load %arg7[%c0_9, %c0_10] : memref<8x1xf32, #tpu.memory_space<vmem>>, vector<8x1xf32>
    %14 = arith.subf %9, %12 : vector<8x1xf32>
    %15 = math.exp %14 : vector<8x1xf32>
    %16 = arith.mulf %13, %15 : vector<8x1xf32>
    %17 = vector.broadcast %12 : vector<8x1xf32> to vector<8x128xf32>
    %18 = arith.subf %8, %17 : vector<8x128xf32>
    %19 = math.exp %18 : vector<8x128xf32>
    %cst_11 = arith.constant dense<0.000000e+00> : vector<8xf32>
    %20 = vector.multi_reduction <add>, %19, %cst_11 [1] : vector<8x128xf32> to vector<8xf32>
    %21 = vector.shape_cast %20 : vector<8xf32> to vector<8x1xf32>
    %22 = arith.addf %16, %21 : vector<8x1xf32>
    %c0_12 = arith.constant 0 : index
    %c0_13 = arith.constant 0 : index
    %23 = vector.load %arg7[%c0_12, %c0_13] : memref<8x1xf32, #tpu.memory_space<vmem>>, vector<8x1xf32>
    tpu.vector_store %arg7[%c0_12, %c0_13], %22 {strides = array<i32>} : memref<8x1xf32, #tpu.memory_space<vmem>>, vector<8x1xf32>,
    %c0_14 = arith.constant 0 : index
    %c0_15 = arith.constant 0 : index
    %24 = vector.load %arg6[%c0_14, %c0_15] : memref<8x1xf32, #tpu.memory_space<vmem>>, vector<8x1xf32>
    tpu.vector_store %arg6[%c0_14, %c0_15], %12 {strides = array<i32>} : memref<8x1xf32, #tpu.memory_space<vmem>>, vector<8x1xf32>,
    %c128_i32 = arith.constant 128 : i32
    %25 = arith.muli %arg1, %c128_i32 : i32
    %26 = tpu.assume_multiple %25, 128 : i32
    %c0_16 = arith.constant 0 : index
    %27 = arith.index_cast %26 : i32 to index
    %28 = vector.load %arg5[%c0_16, %27] : memref<8x128xf32, #tpu.memory_space<vmem>>, vector<8x128xf32>
    tpu.vector_store %arg5[%c0_16, %27], %8 {strides = array<i32>} : memref<8x128xf32, #tpu.memory_space<vmem>>, vector<8x128xf32>,
    %c0_i32_17 = arith.constant 0 : i32
    %29 = arith.cmpi eq, %arg1, %c0_i32_17 : i32
    %30 = arith.extui %29 : i1 to i32
    %c0_i32_18 = arith.constant 0 : i32
    %31 = arith.cmpi ne, %30, %c0_i32_18 : i32
    scf.if %31 {
      %c0_19 = arith.constant 0 : index
      %c0_20 = arith.constant 0 : index
      %32 = vector.load %arg6[%c0_19, %c0_20] : memref<8x1xf32, #tpu.memory_space<vmem>>, vector<8x1xf32>
      %c0_21 = arith.constant 0 : index
      %c0_22 = arith.constant 0 : index
      %33 = vector.load %arg7[%c0_21, %c0_22] : memref<8x1xf32, #tpu.memory_space<vmem>>, vector<8x1xf32>
      %34 = math.log %33 : vector<8x1xf32>
      %35 = arith.addf %32, %34 : vector<8x1xf32>
      %c0_23 = arith.constant 0 : index
      %c0_24 = arith.constant 0 : index
      %36 = vector.load %arg5[%c0_23, %c0_24] : memref<8x128xf32, #tpu.memory_space<vmem>>, vector<8x128xf32>
      %37 = vector.broadcast %35 : vector<8x1xf32> to vector<8x128xf32>
      %38 = arith.subf %36, %37 : vector<8x128xf32>
      %c0_25 = arith.constant 0 : index
      %c0_26 = arith.constant 0 : index
      %39 = vector.load %arg5[%c0_25, %c0_26] : memref<8x128xf32, #tpu.memory_space<vmem>>, vector<8x128xf32>
      tpu.vector_store %arg5[%c0_25, %c0_26], %38 {strides = array<i32>} : memref<8x128xf32, #tpu.memory_space<vmem>>, vector<8x128xf32>,
    } else {
    }
    return
  }
  func.func @transform_0(%arg0: i32, %arg1: i32) -> (i32, i32) {
    %c0_i32 = arith.constant 0 : i32
    %c0_i32_0 = arith.constant 0 : i32
    return %arg0, %c0_i32 : i32, i32
  }
  func.func @transform_1(%arg0: i32, %arg1: i32) -> (i32, i32) {
    %c0_i32 = arith.constant 0 : i32
    %c0_i32_0 = arith.constant 0 : i32
    return %c0_i32, %arg1 : i32, i32
  }
  func.func @transform_2(%arg0: i32, %arg1: i32) -> (i32, i32) {
    %c0_i32 = arith.constant 0 : i32
    %c0_i32_0 = arith.constant 0 : i32
    return %c0_i32, %arg1 : i32, i32
  }
  func.func @transform_3(%arg0: i32, %arg1: i32) -> (i32, i32) {
    %c0_i32 = arith.constant 0 : i32
    %c0_i32_0 = arith.constant 0 : i32
    return %arg0, %c0_i32 : i32, i32
  }
}

</mosaic_0001>

<bundles_post_ra>
// kernel: generator_pallas.1
= control target key start
LH: loop header
LB: loop body
LE: loop exit
PB: predicated region body
PF: predicated region fallthrough
CT: control target
= control target key end

     0   :  { %8 = vsyncpa [#allocation5], 0  ;;  %s1095_s0 = inlined_call_operand.hbm [shape: f32[16,32], index: 0, kind: input, shape index: {}]   ;;  %s1096_s1 = inlined_call_operand.hbm [shape: f32[32,128], index: 1, kind: input, shape index: {}]   ;;  %s1097_s2 = inlined_call_operand.hbm [shape: f32[1,128], index: 2, kind: input, shape index: {}]   ;;  %s1098_s3 = inlined_call_operand.hbm [shape: f32[16,128], index: 3, kind: output, shape index: {}]  }
   0x1   :  { %10 = vsyncpa [#allocation5 + $0x1], 0 }
   0x2   :  { %11 = vsyncpa [#allocation8], 0 }
   0x3   :  { %12 = vsyncpa [#allocation6], 0 }
   0x4   :  { %14 = vsyncpa [#allocation6 + $0x1], 0  ;;  %s836_s12 = smov 0   ;;  %s838_s13 = smov 0  }
   0x5   :  { %s840_s14 = smov 0   ;;  %s842_s15 = smov 0  }
   0x6   :  { %s844_s16 = smov 0   ;;  %s846_s17 = smov 0  }
   0x7 LB: > { %s492_s18 = sadd.s32 4294967295, %s803_s17   ;;  %s493_s19 = sadd.s32 4294967294, %s803_s17   ;;  %s803_s17 = sphi %s846_s17, %s20_s17   ;;  %s799_s16 = sphi %s844_s16, %s1120_s16   ;;  %s795_s15 = sphi %s842_s15, %s1119_s15   ;;  %s791_s14 = sphi %s840_s14, %s1118_s14   ;;  %s787_s13 = sphi %s838_s13, %s1117_s13   ;;  %s783_s12 = sphi %s836_s12, %s1116_s12  }
   0x8   : > { %p52_p0 = scmp.ne.s32.totalorder %s787_s13, %s783_s12  ;;  %p870_p1 = scmp.eq.s32.totalorder %s492_s18, 0 }
   0x9   : > { %p874_p2 = scmp.eq.s32.totalorder %s492_s18, 1  ;;  %p134_p3 = scmp.eq.s32.totalorder %s493_s19, 1 }
   0xa   : > { %s1103_s20 = scalar_select %p870_p1, 1, 0 }
   0xb   : > { %p880_p4 = por %p870_p1, %p52_p0  ;;  %p494_p5 = scmp.ge.s32.totalorder %s803_s17, 1 }
   0xc   : > { %p885_p6 = por %p134_p3, %p52_p0  ;;  %p141_p7 = scmp.lt.s32.totalorder %s803_s17, 3 }
   0xd   : > { %s1105_s22 = scalar_select %p880_p4, 1, 0 }
   0xe   : > { %s1106_s23 = scalar_select %p885_p6, 1, 0 }
   0xf   : > { %p890_p8 = pnand %p494_p5, %p141_p7  ;;  %s805_s25 = smov [#allocation7]  }
  0x10   : > { %s155_s26 = sshll.u32 %s805_s25, 4  ;;  %s806_s28 = smov [#allocation9]   ;;  %s894_s26 = int_to_ptr.vmem [resolvable:$true] %s155_s26 }
  0x11   : > { %p545_p9 = pneg %p890_p8  ;;  %s171_s29 = sshll.u32 %s806_s28, 4  ;;  %s905_s29 = int_to_ptr.vmem [resolvable:$true] %s171_s29 }
  0x12   : > { %s631_s5 = scalar_lea.hbm %s1096_s1, 512 }
  0x13   : > { %p901_p11 = pnand %p545_p9, %p870_p1  ;;  %p632_p12 = scmp.ne.s32.totalorder %s1096_s1, %s631_s5 }
  0x14   : > { %p638_p5 = scmp.lt.u32.totalorder %s631_s5, %s1096_s1 }
  0x15   : > { %p633_p13 = pneg %p901_p11 }
  0x17   : > { %p634_p0 = pnand %p633_p13, %p632_p12 }
  0x19   : > { %p635_p3 = pneg %p634_p0 }
  0x1b   : > { %p640_p7 = pnand %p638_p5, %p635_p3 }
  0x1d   : > { %643 = shalt.err (!%p640_p7)
}
  0x1e   : > { %s644_s10 = scalar_lea.vmem %s894_s26, 512  ;;  %p652_p1 = scmp.lt.s32.totalorder %s894_s26, %s894_s26 }
  0x1f   : > { %p645_p9 = scmp.ne.s32.totalorder %s894_s26, %s644_s10  ;;  %p653_p12 = scmp.lt.s32.totalorder %s644_s10, %s644_s10 }
  0x21   : > { %p647_p10 = pnand %p645_p9, %p633_p13  ;;  %p654_p0 = por %p653_p12, %p652_p1 }
  0x23   : > { %p648_p6 = pneg %p647_p10 }
  0x25   : > { %p655_p4 = pnand %p654_p0, %p648_p6 }
  0x27   : > { %658 = shalt.err (!%p655_p4)
}
  0x28   : > { %s807_s11 = smov 128   ;;  %s808_s18 = smov 8  }
  0x29   : > { %548 = dma.hbm_to_vmem [thread:$0]  (!%p901_p11), %s1096_s1, 512, %s894_s26, [#allocation8], %s807_s11, %s807_s11, %s808_s18  }
  0x2a   : > { %s659_s4 = scalar_lea.hbm %s1097_s2, 16 }
  0x2b   : > { %p660_p1 = scmp.ne.s32.totalorder %s1097_s2, %s659_s4  ;;  %p666_p10 = scmp.lt.u32.totalorder %s659_s4, %s1097_s2 }
  0x2d   : > { %p662_p4 = pnand %p660_p1, %p633_p13 }
  0x2f   : > { %p663_p6 = pneg %p662_p4 }
  0x31   : > { %p668_p3 = pnand %p666_p10, %p663_p6 }
  0x33   : > { %671 = shalt.err (!%p668_p3)
}
  0x34   : > { %s672_s26 = scalar_lea.vmem %s905_s29, 16  ;;  %s679_s9 = scalar_lea.vmem %s905_s29, 32 }
  0x35   : > { %p673_p5 = scmp.ne.s32.totalorder %s905_s29, %s672_s26  ;;  %p680_p12 = scmp.lt.s32.totalorder %s905_s29, %s905_s29 }
  0x36   : > { %p681_p0 = scmp.lt.s32.totalorder %s679_s9, %s672_s26 }
  0x37   : > { %p675_p7 = pnand %p673_p5, %p633_p13 }
  0x38   : > { %p682_p1 = por %p681_p0, %p680_p12 }
  0x39   : > { %p676_p9 = pneg %p675_p7 }
  0x3b   : > { %p683_p4 = pnand %p682_p1, %p676_p9 }
  0x3d   : > { %686 = shalt.err (!%p683_p4)
}
  0x3e   : > { %551 = dma.hbm_to_vmem [thread:$0]  (!%p901_p11), %s1097_s2, 16, %s905_s29, [#allocation8]  }
  0x3f   : > { %s32_s18 = sadd.s32 1, %s799_s16  ;;  %s39_s19 = sadd.s32 1, %s791_s14 }
  0x40   : > { %p34_p13 = scmp.ge.s32.totalorder %s32_s18, 2  ;;  %p46_p6 = scmp.ne.s32.totalorder %s791_s14, %s787_s13 }
  0x41   : > { %p47_p10 = scmp.eq.s32.totalorder %s803_s17, 0  ;;  %p562_p3 = scmp.lt.s32.totalorder %s803_s17, 2 }
  0x42   : > { %s1122_s18 = smov (%p34_p13, %s32_s18), 0  ;;  %p970_p7 = por %p874_p2, %p46_p6 }
  0x43   : > { %p48_p5 = por %p47_p10, %p46_p6  ;;  %s36_s25 = ssub.s32 %s799_s16, %s1122_s18 }
  0x44   : > { %s1109_s27 = scalar_select %p970_p7, 1, 0 }
  0x45   : > { %s182_s28 = sand.u32 1, %s791_s14   ;;  %p37_p9 = scmp.eq.s32.totalorder %s36_s25, 0 }
  0x46   : > { %s498_s29 = sshll.u32 %s182_s28, 3  ;;  %s499_s30 = sshll.u32 %s799_s16, 7 }
  0x47   : > { %s979_s4 = scalar_select %p37_p9, %s791_s14, %s39_s19  }
  0x48   : > { %s984_s7 = scalar_lea.hbm %s1095_s0, %s499_s30  ;;  %s186_s21 = scalar_lea.vmem [#allocation4], %s498_s29 }
  0x49   : > { %s193_s8 = sshll.u32 %s186_s21, 4  ;;  %p988_p2 = pnand %p562_p3, %p48_p5  ;;  %s992_s8 = int_to_ptr.vmem [resolvable:$true] %s193_s8 }
  0x4a   : > { %s183_s9 = scalar_lea.sflag [#allocation5], %s182_s28  ;;  %s687_s10 = scalar_lea.hbm %s984_s7, 128 }
  0x4b   : > { %p688_p11 = scmp.ne.s32.totalorder %s984_s7, %s687_s10  ;;  %p689_p12 = pneg %p988_p2 }
  0x4c   : > { %s692_s25 = scalar_lea.hbm %s1095_s0, 256  ;;  %p693_p4 = scmp.lt.u32.totalorder %s984_s7, %s1095_s0 }
  0x4d   : > { %p690_p0 = pnand %p689_p12, %p688_p11  ;;  %p694_p13 = scmp.lt.u32.totalorder %s692_s25, %s687_s10 }
  0x4e   : > { %p696_p10 = scmp.lt.u32.totalorder %s687_s10, %s984_s7 }
  0x4f   : > { %p691_p1 = pneg %p690_p0  ;;  %p695_p6 = por %p694_p13, %p693_p4 }
  0x51   : > { %p697_p3 = por %p696_p10, %p695_p6 }
  0x53   : > { %p698_p5 = pnand %p697_p3, %p691_p1 }
  0x55   : > { %701 = shalt.err (!%p698_p5)
}
  0x56   : > { %s702_s28 = scalar_lea.vmem %s992_s8, 128  ;;  %s809_s5 = smov [#allocation4]  }
  0x57   : > { %p703_p9 = scmp.ne.s32.totalorder %s992_s8, %s702_s28  ;;  %s707_s6 = sshll.u32 %s809_s5, 4  ;;  %s708_s6 = int_to_ptr.vmem [resolvable:$false] %s707_s6 }
  0x58   : > { %s709_s21 = scalar_lea.vmem %s708_s6, 256  ;;  %p710_p7 = scmp.lt.s32.totalorder %s992_s8, %s708_s6 }
  0x59   : > { %p705_p11 = pnand %p703_p9, %p689_p12  ;;  %p711_p4 = scmp.lt.s32.totalorder %s709_s21, %s702_s28 }
  0x5b   : > { %p706_p0 = pneg %p705_p11  ;;  %p712_p13 = por %p711_p4, %p710_p7 }
  0x5d   : > { %p713_p6 = pnand %p712_p13, %p706_p0 }
  0x5f   : > { %716 = shalt.err (!%p713_p6)
}
  0x60   : > { %555 = dma.hbm_to_vmem [thread:$0]  (!%p988_p2), %s984_s7, 128, %s992_s8, %s183_s9  }
  0x61   : > { %202 = sbr.rel (%p890_p8) target bundleno = 931 (0x3a3), region = 32  ;;  %s1022_s10 = sand.u32 (!%p890_p8), 1, %s787_s13  }
  0x62   : > { %s501_s11 = sshll.u32 (!%p890_p8), %s1022_s10, 3  ;;  %s205_s19 = scalar_lea.sflag (!%p890_p8), [#allocation5], %s1022_s10 }
  0x63   : > { %s208_s25 = scalar_lea.vmem (!%p890_p8), [#allocation4], %s501_s11  ;;  %p1111_p7 = scmp.ne.s32.totalorder (!%p890_p8), %s1105_s22, 0 }
  0x68   : > { %770 = dma.done.wait (%p1111_p7), %s205_s19, 128  }
  0x69   : > { %772 = vsyncadd (%p1111_p7), %s205_s19, 4294967168  ;;  %p1112_p2 = scmp.ne.s32.totalorder %s1103_s20, 0 }
  0x6b   : > { %774 = dma.done.wait (%p1112_p2), [#allocation8], 528  }
  0x6c   : > { %776 = vsyncadd (%p1112_p2), [#allocation8], 4294966768  ;;  %vm243_vm0 = vcmask 7168   ;;  %v810_v0 = vmov 0.0|0.0   ;;  %v811_v1 = vmov -inf   ;;  %v812_v2 = vmov 0.0  }
  0x6d   : > { %527 = vmatprep.subr.bf16.mxu0 %v810_v0  ;;  %244 = vst.msk [vmem:[#allocation2] sm:$0xff] %vm243_vm0, %v811_v1  ;;  %245 = vst.msk [vmem:[#allocation3] sm:$0xff] %vm243_vm0, %v812_v2  ;;  %vm813_vm1 = vmmov 0   ;;  %v247_v3 = vld [vmem:[#allocation7] sm:$0xff]  ;;  %v248_v4 = vld [vmem:[#allocation7 + $0x8] sm:$0xff]  ;;  %vm258_vm2 = vcmask 261120  }
  0x6e   : > { %524 = vmatprep.mubr.msk.f32.mxu0 %vm813_vm1, %v812_v2  ;;  %v249_v5 = vld [vmem:[#allocation7 + $0x10] sm:$0xff]  ;;  %v528_v6 = vpack.c.bf16 %v248_v4, %v247_v3  ;;  %v250_v7 = vld [vmem:[#allocation7 + $0x18] sm:$0xff]  ;;  %v505_v10 = vld [vmem:[#allocation9] ss:$0 sm:$0xff]  ;;  %v814_v14 = vmov 0   ;;  %s508_s20 = sshll.u32 %s795_s15, 7 }
  0x6f   : > { %v531_v8 = vpack.c.bf16 %v250_v7, %v249_v5  ;;  %v246_v9 = vld [vmem:[%s208_s25] sm:$0xff]  ;;  %623 = vset.pattern.permute.xlu0 %v814_v14  ;;  %624 = vset.pattern.permute.xlu1 %v814_v14  ;;  %s238_s22 = scalar_lea.vmem [#allocation10], %s501_s11  ;;  %s1046_s26 = scalar_lea.hbm %s1098_s3, %s508_s20 }
  0x70   : > { %529 = vmatpush3.bf16.msra.mxu0 %v528_v6  ;;  %s390_s24 = sshll.u32 %s238_s22, 4  ;;  %s377_s9 = scalar_lea.sflag [#allocation6], %s1022_s10  ;;  %s1048_s24 = int_to_ptr.vmem [resolvable:$true] %s390_s24 }
  0x71   : > { %530 = vmatprep.subr.bf16.mxu0 %v810_v0  ;;  %s717_s29 = scalar_lea.vmem %s1048_s24, 128  ;;  %p1113_p12 = scmp.ne.s32.totalorder %s1109_s27, 0 }
  0x72   : > { %p718_p8 = scmp.ne.s32.totalorder %s1048_s24, %s717_s29  ;;  %s815_s15 = smov [#allocation10]  }
  0x73   : > { %s721_s30 = sshll.u32 %s815_s15, 4  ;;  %s722_s30 = int_to_ptr.vmem [resolvable:$false] %s721_s30 }
  0x74   : > { %532 = vmatpush3.bf16.msra.mxu0 %v531_v8  ;;  %v332_v15 = vld [vmem:[#allocation2] sm:$0xff]  ;;  %v336_v25 = vld [vmem:[#allocation3] sm:$0xff]  ;;  %p719_p1 = pnand %p718_p8, %p1113_p12  ;;  %s723_s28 = scalar_lea.vmem %s722_s30, 256 }
  0x75   : > { %p724_p3 = scmp.lt.s32.totalorder %s1048_s24, %s722_s30  ;;  %p725_p5 = scmp.lt.s32.totalorder %s723_s28, %s717_s29 }
  0x76   : > { %p720_p10 = pneg %p719_p1 }
  0x77   : > { %525 = vmatmul.mubr.msk.f32.vlgmr.msra.gmra.mrb[0].mxu0 %vm258_vm2, %v246_v9  ;;  %p726_p9 = por %p725_p5, %p724_p3 }
  0x79   : > { %p727_p11 = pnand %p726_p9, %p720_p10 }
 0x14a   : > { %v328_v11 = vpop.f32.mrb[0].mxu0 }
 0x14b   : > { %v329_v12 = vadd.f32 %v505_v10, %v328_v11  ;;  %v526_v13 = vpop.f32.mrb[1].mxu0 }
 0x14d   : > { %333 = vmax.xlane.f32.xlu0 %v329_v12 }
 0x1da   : > { %v334_v16 = vpop.xlane.xlu0 %333 }
 0x1db   : > { %v335_v17 = vmax.f32 %v332_v15, %v334_v16 }
 0x1dd   : > { %v337_v18 = vsub.f32 %v332_v15, %v335_v17  ;;  %354 = vst.msk [vmem:[#allocation2] sm:$0xff] %vm243_vm0, %v335_v17  ;;  %343 = vperm.xlu0 %623, %v335_v17  }
 0x1df   : > { %v338_v23 = vmul.f32 1.442695, %v337_v18 }
 0x1e4   : > { %v363_v32 = vld [vmem:[#allocation2] sm:$0xff] }
 0x25c   : > { %v344_v19 = vpop.permute.xlu0 %343 }
 0x25d   : > { %v346_v20 = vsub.f32 %v329_v12, %v344_v19 }
 0x25f   : > { %v347_v21 = vmul.f32 1.442695, %v346_v20 }
 0x261   : > { %625 = vpow2.f32 %v347_v21 }
 0x262   : > { %627 = vpow2.f32 %v338_v23 }
 0x26b   : > { %v626_v22 = vpop.eup %625 }
 0x26c   : > { %349 = vadd.xlane.f32.xlu1 %v626_v22  ;;  %v628_v24 = vpop.eup %627 }
 0x26d   : > { %v340_v26 = vmul.f32 %v628_v24, %v336_v25 }
 0x2f9   : > { %v350_v27 = vpop.xlane.xlu1 %349 }
 0x2fa   : > { %v351_v28 = vadd.f32 %v350_v27, %v340_v26 }
 0x2fc   : > { %353 = vst.msk [vmem:[#allocation3] sm:$0xff] %vm243_vm0, %v351_v28 }
 0x303   : > { %v364_v29 = vld [vmem:[#allocation3] sm:$0xff] }
 0x304   : > { %629 = vlog2.f32 %v364_v29 }
 0x30e   : > { %v630_v30 = vpop.eup %629 }
 0x30f   : > { %v366_v31 = vmul.f32 0.6931472, %v630_v30 }
 0x311   : > { %v367_v33 = vadd.f32 %v366_v31, %v363_v32 }
 0x313   : > { %371 = vperm.xlu1 %624, %v367_v33  }
 0x392   : > { %v372_v34 = vpop.permute.xlu1 %371 }
 0x393   : > { %v374_v35 = vsub.f32 %v329_v12, %v372_v34 }
 0x395   : > { %375 = vst [vmem:[%s238_s22] sm:$0xff] %v374_v35 }
 0x396   : > { %730 = shalt.err (!%p727_p11)
}
 0x397   : > { %s731_s5 = scalar_lea.hbm %s1046_s26, 128  ;;  %s735_s10 = scalar_lea.hbm %s1098_s3, 256 }
 0x398   : > { %p732_p0 = scmp.ne.s32.totalorder %s1046_s26, %s731_s5  ;;  %p736_p6 = scmp.lt.u32.totalorder %s1046_s26, %s1098_s3 }
 0x399   : > { %p737_p7 = scmp.lt.u32.totalorder %s735_s10, %s731_s5  ;;  %p739_p8 = scmp.lt.u32.totalorder %s731_s5, %s1046_s26 }
 0x39a   : > { %p733_p4 = pnand %p732_p0, %p1113_p12 }
 0x39b   : > { %p738_p2 = por %p737_p7, %p736_p6 }
 0x39c   : > { %p734_p13 = pneg %p733_p4 }
 0x39d   : > { %p740_p1 = por %p739_p8, %p738_p2 }
 0x39f   : > { %p741_p10 = pnand %p740_p1, %p734_p13 }
 0x3a1   : > { %744 = shalt.err (!%p741_p10)
}
 0x3a2   : > { %543 = dma.vmem_to_hbm [thread:$0]  (%p1113_p12), %s1048_s24, 128, %s1046_s26, %s377_s9  }
 0x3a3 PF: > { %s402_s25 = sand.u32 1, %s783_s12   ;;  %p1114_p3 = scmp.ne.s32.totalorder %s1106_s23, 0 }
 0x3a4   : > { %p1115_p5 = scmp.ge.s32.totalorder %s803_s17, 2  ;;  %s403_s20 = scalar_lea.sflag [#allocation6], %s402_s25 }
 0x3a6   : > { %p557_p9 = pnand %p1115_p5, %p1114_p3 }
 0x3a8   : > { %778 = dma.done.wait (!%p557_p9), %s403_s20, 128  }
 0x3a9   : > { %780 = vsyncadd (!%p557_p9), %s403_s20, 4294967168  ;;  %s20_s17 = sadd.s32 1, %s803_s17   ;;  %s1116_s12 = smov %s787_s13 }
 0x3aa   : > { %p17_p11 = scmp.ge.s32.totalorder %s20_s17, 4   ;;  %s1117_s13 = smov %s791_s14 }
 0x3ab   : > { %s1118_s14 = smov %s979_s4  ;;  %s1119_s15 = smov %s799_s16 }
 0x3ac   : > { %s1120_s16 = smov %s1122_s18  ;;  %19 = sbr.rel (!%p17_p11) target bundleno = 7 (0x7), region = 96 }
 0x3b3   :  { %408 = vsyncpa [#allocation5], 1 }
 0x3b4   :  { %410 = vsyncpa [#allocation5 + $0x1], 1 }
 0x3b5   :  { %411 = vsyncpa [#allocation8], 1 }
 0x3b6   :  { %412 = vsyncpa [#allocation6], 1 }
 0x3b7   :  { %414 = vsyncpa [#allocation6 + $0x1], 1 }

</bundles_post_ra>
